<compile_context>
chip_gen: v6e
topology: v6e:2x2x1
jax: 0.10.0
libtpu: 0.0.40
codegen_flags: <defaults>
</compile_context>

<pallas_src>
import functools

import jax
import jax.numpy as jnp
from jax.experimental import pallas as pl
from jax.experimental.pallas import tpu as pltpu


def _round_up(x, m):
    return (x + m - 1) // m * m


def _per_lane_sum(x):
    """(1, TL) -> (1, 128): sum over 128-wide lane groups via static slices + VPU adds."""
    tl = x.shape[-1]
    acc = x[:, 0:128]
    for g in range(1, tl // 128):
        acc = acc + x[:, g * 128:(g + 1) * 128]
    return acc


def _psp_ce_kernel(main_ref, aux_ref, tgt_ref, out_ref, *, ignore_index, hw):
    """One grid step = one (batch, pixel-tile) block.

    main_ref / aux_ref : (1, C, TL) logits tile (classes on sublanes, pixels on lanes)
    tgt_ref            : (1, 1, TL) int32 targets (lane-dense; tail of last tile undefined)
    out_ref            : (1, 3, 128) f32 per-lane partial sums [main, aux, valid_count]
    """
    nclass = main_ref.shape[1]
    tl = main_ref.shape[2]
    j = pl.program_id(1)

    tgt = tgt_ref[0]                                           # (1, TL) int32
    # In-bounds mask for the ragged last tile (no host-side padding of inputs).
    pix = jax.lax.broadcasted_iota(jnp.int32, (1, tl), 1) + j * tl
    valid = (pix < hw) & (tgt != ignore_index)                 # (1, TL) bool
    valid_f = valid.astype(jnp.float32)
    safe_tgt = jnp.where(valid, tgt, 0)                        # keep one-hot well-defined

    # Hoisted one-hot: depends only on the target tile, shared by both heads.
    classes = jax.lax.broadcasted_iota(jnp.int32, (nclass, tl), 0)   # (C, TL)
    onehot = (classes == safe_tgt).astype(jnp.float32)               # (C, TL)

    def masked_ce(logits_ref):
        logits = logits_ref[0].astype(jnp.float32)             # (C, TL), cast after DMA
        m = jnp.max(logits, axis=0, keepdims=True)             # (1, TL) sublane reduce
        lse = m + jnp.log(jnp.sum(jnp.exp(logits - m), axis=0, keepdims=True))
        picked = jnp.sum(logits * onehot, axis=0, keepdims=True)       # (1, TL)
        # where (not *valid_f): undefined tail VMEM may hold NaN/Inf; 0*NaN != 0.
        return jnp.where(valid, lse - picked, 0.0)             # (1, TL)

    # Single merged output block per step (one DMA descriptor).
    out_ref[0, 0:1, :] = _per_lane_sum(masked_ce(main_ref))    # main partial sums
    out_ref[0, 1:2, :] = _per_lane_sum(masked_ce(aux_ref))     # aux partial sums
    out_ref[0, 2:3, :] = _per_lane_sum(valid_f)                # valid-pixel count


def psp_loss(outputs, targets, aux_weight=0.4, ignore_index=-100,
             max_tile_pixels=32768):
    """PSPLoss.forward: CE(outputs[0], t) + aux_weight * CE(outputs[1], t), mean-reduced."""
    main, aux = outputs[0], outputs[1]
    N, C, H, W = main.shape
    HW = H * W

    # Free reshapes (row-major contiguous): NCHW -> (N, C, HW). No transpose, no cast.
    x_main = main.reshape(N, C, HW)
    x_aux = aux.reshape(N, C, HW)
    tgt = targets.reshape(N, 1, HW).astype(jnp.int32)

    # Tile width: largest multiple of 128 keeping the double-buffered input footprint
    # (2 heads x 2 bufs x C*tl*itemsize + 2 bufs x tl*4 targets) under ~24 MiB;
    # vmem_limit_bytes is raised to 32 MiB to match (fits v5e/v6e and v7x's 64 MiB).
    itemsize = jnp.dtype(main.dtype).itemsize
    vmem_budget = 24 * 1024 * 1024
    cap = vmem_budget // (4 * C * itemsize + 8)
    cap = max(128, min(cap, max_tile_pixels))
    cap = (cap // 128) * 128
    tl = min(cap, _round_up(HW, 128))
    # v7x has 2 TensorCores: when N == 1 keep >= ~4 pixel-tiles so both get work.
    if N == 1 and HW > 128:
        tl = min(tl, max(128, _round_up(pl.cdiv(HW, 4), 128)))

    g_hw = pl.cdiv(HW, tl)          # ragged last tile masked in-kernel (no input pad)
    g_total = N * g_hw

    kernel = functools.partial(_psp_ce_kernel, ignore_index=ignore_index, hw=HW)

    parts = pl.pallas_call(
        kernel,
        out_shape=jax.ShapeDtypeStruct((g_total, 3, 128), jnp.float32),
        grid_spec=pltpu.PrefetchScalarGridSpec(
            num_scalar_prefetch=0,
            grid=(N, g_hw),
            in_specs=[
                pl.BlockSpec((1, C, tl), lambda n, j: (n, 0, j)),   # main logits
                pl.BlockSpec((1, C, tl), lambda n, j: (n, 0, j)),   # aux logits
                pl.BlockSpec((1, 1, tl), lambda n, j: (n, 0, j)),   # targets
            ],
            out_specs=pl.BlockSpec((1, 3, 128), lambda n, j: (n * g_hw + j, 0, 0)),
        ),
        compiler_params=pltpu.CompilerParams(
            dimension_semantics=("parallel", "parallel"),
            vmem_limit_bytes=32 * 1024 * 1024,
        ),
    )(x_main, x_aux, tgt)

    # Tiny final reduction in plain JAX (pairwise sums -> good fp32 accuracy).
    # Denominator = number of non-ignored pixels (shared by both heads, as in PyTorch).
    count = jnp.sum(parts[:, 2, :])
    loss_main = jnp.sum(parts[:, 0, :]) / count
    loss_aux = jnp.sum(parts[:, 1, :]) / count
    return loss_main + aux_weight * loss_aux


def _reference_psp_loss(outputs, targets, aux_weight=0.4, ignore_index=-100):
    """Pure-JAX replica of PyTorch F.cross_entropy(reduction='mean') x2 + weight."""
    def ce(logits, tgt):
        logp = jax.nn.log_softmax(logits.astype(jnp.float32), axis=1)   # (N,C,H,W)
        safe = jnp.clip(tgt, 0, logits.shape[1] - 1)
        picked = jnp.take_along_axis(logp, safe[:, None, :, :], axis=1)[:, 0]
        valid = (tgt != ignore_index).astype(jnp.float32)
        return -(jnp.sum(picked * valid) / jnp.sum(valid))
    return ce(outputs[0], targets) + aux_weight * ce(outputs[1], targets)


if __name__ == "__main__":
    key = jax.random.PRNGKey(0)
    k1, k2, k3 = jax.random.split(key, 3)

    N, C, H, W = 2, 4, 16, 16
    logits_main = jax.random.normal(k1, (N, C, H, W), dtype=jnp.float32)
    logits_aux = jax.random.normal(k2, (N, C, H, W), dtype=jnp.float32)
    targets = jax.random.randint(k3, (N, H, W), 0, C, dtype=jnp.int32)

    loss = psp_loss((logits_main, logits_aux), targets, aux_weight=0.4)
    loss = jax.block_until_ready(loss)

    ref = jax.block_until_ready(
        _reference_psp_loss((logits_main, logits_aux), targets, aux_weight=0.4)
    )
    assert jnp.allclose(loss, ref, rtol=1e-5, atol=1e-5), (loss, ref)

    print("KERNEL_OK")
</pallas_src>

<mosaic_0001>
module attributes {stable_mosaic.version = 11 : i64} {
  func.func @_psp_ce_kernel(%arg0: i32, %arg1: i32, %arg2: memref<1x4x256xf32, #tpu.memory_space<vmem>>, %arg3: memref<1x4x256xf32, #tpu.memory_space<vmem>>, %arg4: memref<1x1x256xi32, #tpu.memory_space<vmem>>, %arg5: memref<1x3x128xf32, #tpu.memory_space<vmem>>) attributes {dimension_semantics = [#tpu.dimension_semantics<parallel>, #tpu.dimension_semantics<parallel>], iteration_bounds = array<i64: 2, 1>, scalar_prefetch = 0 : i64, scratch_operands = 0 : i64, tpu.core_type = #tpu.core_type<tc>, window_params = [{transform_indices = @transform_0, window_bounds = array<i64: 1, 4, 256>}, {transform_indices = @transform_1, window_bounds = array<i64: 1, 4, 256>}, {transform_indices = @transform_2, window_bounds = array<i64: 1, 1, 256>}, {transform_indices = @transform_3, window_bounds = array<i64: 1, 3, 128>}]} {
    %c0 = arith.constant 0 : index
    %c0_0 = arith.constant 0 : index
    %c0_1 = arith.constant 0 : index
    %0 = vector.load %arg4[%c0, %c0_0, %c0_1] : memref<1x1x256xi32, #tpu.memory_space<vmem>>, vector<1x1x256xi32>
    %1 = vector.shape_cast %0 : vector<1x1x256xi32> to vector<1x256xi32>
    %2 = tpu.iota {dimensions = array<i32: 1>} : vector<1x256xi32>
    %c256_i32 = arith.constant 256 : i32
    %3 = arith.muli %arg1, %c256_i32 : i32
    %4 = vector.broadcast %3 : i32 to vector<1x256xi32>
    %5 = arith.addi %2, %4 : vector<1x256xi32>
    %c256_i32_2 = arith.constant 256 : i32
    %6 = vector.broadcast %c256_i32_2 : i32 to vector<1x256xi32>
    %7 = arith.cmpi slt, %5, %6 : vector<1x256xi32>
    %c-100_i32 = arith.constant -100 : i32
    %8 = vector.broadcast %c-100_i32 : i32 to vector<1x256xi32>
    %9 = arith.cmpi ne, %1, %8 : vector<1x256xi32>
    %10 = arith.andi %7, %9 : vector<1x256xi1>
    %11 = arith.extui %10 : vector<1x256xi1> to vector<1x256xi32>
    %12 = arith.sitofp %11 : vector<1x256xi32> to vector<1x256xf32>
    %c0_i32 = arith.constant 0 : i32
    %13 = vector.broadcast %c0_i32 : i32 to vector<1x256xi32>
    %14 = arith.select %10, %1, %13 : vector<1x256xi1>, vector<1x256xi32>
    %15 = tpu.iota {dimensions = array<i32: 0>} : vector<4x256xi32>
    %16 = vector.broadcast %14 : vector<1x256xi32> to vector<4x256xi32>
    %17 = arith.cmpi eq, %15, %16 : vector<4x256xi32>
    %18 = arith.extui %17 : vector<4x256xi1> to vector<4x256xi32>
    %19 = arith.sitofp %18 : vector<4x256xi32> to vector<4x256xf32>
    %c0_3 = arith.constant 0 : index
    %c0_4 = arith.constant 0 : index
    %c0_5 = arith.constant 0 : index
    %20 = vector.load %arg2[%c0_3, %c0_4, %c0_5] : memref<1x4x256xf32, #tpu.memory_space<vmem>>, vector<1x4x256xf32>
    %21 = vector.shape_cast %20 : vector<1x4x256xf32> to vector<4x256xf32>
    %cst = arith.constant dense<0xFF800000> : vector<256xf32>
    %22 = vector.multi_reduction <maximumf>, %21, %cst [0] : vector<4x256xf32> to vector<256xf32>
    %23 = vector.shape_cast %22 : vector<256xf32> to vector<1x256xf32>
    %24 = vector.broadcast %23 : vector<1x256xf32> to vector<4x256xf32>
    %25 = arith.subf %21, %24 : vector<4x256xf32>
    %26 = math.exp %25 : vector<4x256xf32>
    %cst_6 = arith.constant dense<0.000000e+00> : vector<256xf32>
    %27 = vector.multi_reduction <add>, %26, %cst_6 [0] : vector<4x256xf32> to vector<256xf32>
    %28 = vector.shape_cast %27 : vector<256xf32> to vector<1x256xf32>
    %29 = math.log %28 : vector<1x256xf32>
    %30 = arith.addf %23, %29 : vector<1x256xf32>
    %31 = arith.mulf %21, %19 : vector<4x256xf32>
    %cst_7 = arith.constant dense<0.000000e+00> : vector<256xf32>
    %32 = vector.multi_reduction <add>, %31, %cst_7 [0] : vector<4x256xf32> to vector<256xf32>
    %33 = vector.shape_cast %32 : vector<256xf32> to vector<1x256xf32>
    %34 = arith.subf %30, %33 : vector<1x256xf32>
    %cst_8 = arith.constant 0.000000e+00 : f32
    %35 = vector.broadcast %cst_8 : f32 to vector<1x256xf32>
    %36 = arith.select %10, %34, %35 : vector<1x256xi1>, vector<1x256xf32>
    %37 = vector.extract_strided_slice %36 {offsets = [0, 0], sizes = [1, 128], strides = [1, 1]} : vector<1x256xf32> to vector<1x128xf32>
    %38 = vector.extract_strided_slice %36 {offsets = [0, 128], sizes = [1, 128], strides = [1, 1]} : vector<1x256xf32> to vector<1x128xf32>
    %39 = arith.addf %37, %38 : vector<1x128xf32>
    %c0_9 = arith.constant 0 : index
    %c0_10 = arith.constant 0 : index
    %c0_11 = arith.constant 0 : index
    %40 = vector.load %arg5[%c0_9, %c0_10, %c0_11] : memref<1x3x128xf32, #tpu.memory_space<vmem>>, vector<1x1x128xf32>
    %41 = vector.shape_cast %40 : vector<1x1x128xf32> to vector<1x128xf32>
    %42 = vector.shape_cast %39 : vector<1x128xf32> to vector<1x1x128xf32>
    tpu.vector_store %arg5[%c0_9, %c0_10, %c0_11], %42 {strides = array<i32>} : memref<1x3x128xf32, #tpu.memory_space<vmem>>, vector<1x1x128xf32>,
    %c0_12 = arith.constant 0 : index
    %c0_13 = arith.constant 0 : index
    %c0_14 = arith.constant 0 : index
    %43 = vector.load %arg3[%c0_12, %c0_13, %c0_14] : memref<1x4x256xf32, #tpu.memory_space<vmem>>, vector<1x4x256xf32>
    %44 = vector.shape_cast %43 : vector<1x4x256xf32> to vector<4x256xf32>
    %cst_15 = arith.constant dense<0xFF800000> : vector<256xf32>
    %45 = vector.multi_reduction <maximumf>, %44, %cst_15 [0] : vector<4x256xf32> to vector<256xf32>
    %46 = vector.shape_cast %45 : vector<256xf32> to vector<1x256xf32>
    %47 = vector.broadcast %46 : vector<1x256xf32> to vector<4x256xf32>
    %48 = arith.subf %44, %47 : vector<4x256xf32>
    %49 = math.exp %48 : vector<4x256xf32>
    %cst_16 = arith.constant dense<0.000000e+00> : vector<256xf32>
    %50 = vector.multi_reduction <add>, %49, %cst_16 [0] : vector<4x256xf32> to vector<256xf32>
    %51 = vector.shape_cast %50 : vector<256xf32> to vector<1x256xf32>
    %52 = math.log %51 : vector<1x256xf32>
    %53 = arith.addf %46, %52 : vector<1x256xf32>
    %54 = arith.mulf %44, %19 : vector<4x256xf32>
    %cst_17 = arith.constant dense<0.000000e+00> : vector<256xf32>
    %55 = vector.multi_reduction <add>, %54, %cst_17 [0] : vector<4x256xf32> to vector<256xf32>
    %56 = vector.shape_cast %55 : vector<256xf32> to vector<1x256xf32>
    %57 = arith.subf %53, %56 : vector<1x256xf32>
    %cst_18 = arith.constant 0.000000e+00 : f32
    %58 = vector.broadcast %cst_18 : f32 to vector<1x256xf32>
    %59 = arith.select %10, %57, %58 : vector<1x256xi1>, vector<1x256xf32>
    %60 = vector.extract_strided_slice %59 {offsets = [0, 0], sizes = [1, 128], strides = [1, 1]} : vector<1x256xf32> to vector<1x128xf32>
    %61 = vector.extract_strided_slice %59 {offsets = [0, 128], sizes = [1, 128], strides = [1, 1]} : vector<1x256xf32> to vector<1x128xf32>
    %62 = arith.addf %60, %61 : vector<1x128xf32>
    %c0_19 = arith.constant 0 : index
    %c1 = arith.constant 1 : index
    %c0_20 = arith.constant 0 : index
    %63 = vector.load %arg5[%c0_19, %c1, %c0_20] : memref<1x3x128xf32, #tpu.memory_space<vmem>>, vector<1x1x128xf32>
    %64 = vector.shape_cast %63 : vector<1x1x128xf32> to vector<1x128xf32>
    %65 = vector.shape_cast %62 : vector<1x128xf32> to vector<1x1x128xf32>
    tpu.vector_store %arg5[%c0_19, %c1, %c0_20], %65 {strides = array<i32>} : memref<1x3x128xf32, #tpu.memory_space<vmem>>, vector<1x1x128xf32>,
    %66 = vector.extract_strided_slice %12 {offsets = [0, 0], sizes = [1, 128], strides = [1, 1]} : vector<1x256xf32> to vector<1x128xf32>
    %67 = vector.extract_strided_slice %12 {offsets = [0, 128], sizes = [1, 128], strides = [1, 1]} : vector<1x256xf32> to vector<1x128xf32>
    %68 = arith.addf %66, %67 : vector<1x128xf32>
    %c0_21 = arith.constant 0 : index
    %c2 = arith.constant 2 : index
    %c0_22 = arith.constant 0 : index
    %69 = vector.load %arg5[%c0_21, %c2, %c0_22] : memref<1x3x128xf32, #tpu.memory_space<vmem>>, vector<1x1x128xf32>
    %70 = vector.shape_cast %69 : vector<1x1x128xf32> to vector<1x128xf32>
    %71 = vector.shape_cast %68 : vector<1x128xf32> to vector<1x1x128xf32>
    tpu.vector_store %arg5[%c0_21, %c2, %c0_22], %71 {strides = array<i32>} : memref<1x3x128xf32, #tpu.memory_space<vmem>>, vector<1x1x128xf32>,
    return
  }
  func.func @transform_0(%arg0: i32, %arg1: i32) -> (i32, i32, i32) {
    %c0_i32 = arith.constant 0 : i32
    %c0_i32_0 = arith.constant 0 : i32
    return %arg0, %c0_i32, %arg1 : i32, i32, i32
  }
  func.func @transform_1(%arg0: i32, %arg1: i32) -> (i32, i32, i32) {
    %c0_i32 = arith.constant 0 : i32
    %c0_i32_0 = arith.constant 0 : i32
    return %arg0, %c0_i32, %arg1 : i32, i32, i32
  }
  func.func @transform_2(%arg0: i32, %arg1: i32) -> (i32, i32, i32) {
    %c0_i32 = arith.constant 0 : i32
    %c0_i32_0 = arith.constant 0 : i32
    return %arg0, %c0_i32, %arg1 : i32, i32, i32
  }
  func.func @transform_3(%arg0: i32, %arg1: i32) -> (i32, i32, i32) {
    %c1_i32 = arith.constant 1 : i32
    %0 = arith.muli %arg0, %c1_i32 : i32
    %1 = arith.addi %0, %arg1 : i32
    %c0_i32 = arith.constant 0 : i32
    %c0_i32_0 = arith.constant 0 : i32
    %c0_i32_1 = arith.constant 0 : i32
    return %1, %c0_i32, %c0_i32_0 : i32, i32, i32
  }
}

</mosaic_0001>

<bundles_post_ra>
// kernel: tpu_custom_call.1
= control target key start
LH: loop header
LB: loop body
LE: loop exit
PB: predicated region body
PF: predicated region fallthrough
CT: control target
= control target key end

     0   :  { %8 = vsyncpa [#allocation3], 0  ;;  %s1118_s0 = inlined_call_operand.hbm [shape: f32[2,4,256], index: 0, kind: input, shape index: {}]   ;;  %s1119_s1 = inlined_call_operand.hbm [shape: f32[2,4,256], index: 1, kind: input, shape index: {}]   ;;  %s1120_s2 = inlined_call_operand.hbm [shape: s32[2,1,256], index: 2, kind: input, shape index: {}]   ;;  %s1121_s3 = inlined_call_operand.vmem [shape: f32[2,3,128], index: 3, kind: output, shape index: {}]  }
   0x1   :  { %10 = vsyncpa [#allocation3 + $0x1], 0 }
   0x2   :  { %11 = vsyncpa [#allocation5], 0 }
   0x3   :  { %13 = vsyncpa [#allocation5 + $0x1], 0  ;;  %s898_s12 = smov 0   ;;  %s900_s13 = smov 0  }
   0x4   :  { %s902_s14 = smov 0   ;;  %s904_s15 = smov 0  }
   0x5   :  { %s906_s16 = smov 0   ;;  %s908_s17 = smov 0  }
   0x6 LB: > { %s625_s18 = sadd.s32 4294967295, %s871_s17   ;;  %s31_s19 = sadd.s32 1, %s867_s16  ;;  %s871_s17 = sphi %s908_s17, %s19_s17   ;;  %s867_s16 = sphi %s906_s16, %s1131_s16   ;;  %s863_s15 = sphi %s904_s15, %s1130_s15   ;;  %s859_s14 = sphi %s902_s14, %s1129_s14   ;;  %s855_s13 = sphi %s900_s13, %s1128_s13   ;;  %s851_s12 = sphi %s898_s12, %s1127_s12  }
   0x7   : > { %p33_p0 = scmp.ge.s32.totalorder %s31_s19, 2  ;;  %s40_s20 = sadd.s32 1, %s859_s14 }
   0x8   : > { %p47_p1 = scmp.ne.s32.totalorder %s859_s14, %s855_s13  ;;  %p48_p2 = scmp.eq.s32.totalorder %s871_s17, 0 }
   0x9   : > { %s1133_s19 = smov (%p33_p0, %s31_s19), 0  ;;  %p53_p4 = scmp.ne.s32.totalorder %s855_s13, %s851_s12 }
   0xa   : > { %p49_p3 = por %p48_p2, %p47_p1  ;;  %s35_s21 = ssub.s32 %s867_s16, %s1133_s19 }
   0xb   : > { %p54_p5 = scmp.eq.s32.totalorder %s625_s18, 0  ;;  %p38_p6 = scmp.eq.s32.totalorder %s35_s21, 0 }
   0xc   : > { %p668_p8 = scmp.lt.s32.totalorder %s871_s17, 2  ;;  %s948_s24 = sand.u32 1, %s859_s14  }
   0xd   : > { %p939_p7 = por %p54_p5, %p53_p4  ;;  %s649_s25 = sshll.u32 %s867_s16, 7 }
   0xe   : > { %s945_s23 = scalar_select %p38_p6, %s859_s14, %s40_s20  }
   0xf   : > { %s629_s26 = sshll.u32 %s948_s24, 3  ;;  %p952_p9 = pnand %p668_p8, %p49_p3 }
  0x10   : > { %s182_s28 = sand.u32 1, %s871_s17   ;;  %s194_s4 = scalar_lea.hbm %s1119_s1, %s649_s25 }
  0x11   : > { %s186_s5 = scalar_lea.vmem [#allocation4], %s629_s26  ;;  %p638_p10 = scmp.ge.s32.totalorder %s871_s17, 1 }
  0x12   : > { %s196_s6 = sshll.u32 %s186_s5, 4  ;;  %s961_s7 = scalar_lea.sflag [#allocation5], %s182_s28  ;;  %s197_s6 = int_to_ptr.vmem [resolvable:$true] %s196_s6 }
  0x13   : > { %p735_p11 = pneg %p952_p9  ;;  %s746_s8 = scalar_lea.vmem %s197_s6, 128 }
  0x14   : > { %p747_p12 = scmp.ne.s32.totalorder %s197_s6, %s746_s8  ;;  %s873_s9 = smov [#allocation4]  }
  0x15   : > { %s751_s10 = sshll.u32 %s873_s9, 4  ;;  %s752_s10 = int_to_ptr.vmem [resolvable:$false] %s751_s10 }
  0x16   : > { %p749_p13 = pnand %p747_p12, %p735_p11  ;;  %s753_s11 = scalar_lea.vmem %s752_s10, 256 }
  0x17   : > { %p754_p1 = scmp.lt.s32.totalorder %s197_s6, %s752_s10  ;;  %p755_p2 = scmp.lt.s32.totalorder %s753_s11, %s746_s8 }
  0x18   : > { %p750_p0 = pneg %p749_p13 }
  0x19   : > { %p756_p3 = por %p755_p2, %p754_p1 }
  0x1b   : > { %p757_p4 = pnand %p756_p3, %p750_p0 }
  0x1d   : > { %760 = shalt.err (!%p757_p4)
}
  0x1e   : > { %664 = dma.hbm_to_vmem [thread:$0]  (!%p952_p9), %s194_s4, 128, %s197_s6, %s961_s7  }
  0x1f   : > { %p222_p5 = scmp.lt.s32.totalorder %s871_s17, 3  ;;  %s173_s28 = scalar_lea.hbm %s1118_s0, %s649_s25 }
  0x20   : > { %s165_s29 = scalar_lea.vmem [#allocation2], %s629_s26  ;;  %s635_s5 = sshll.u32 %s948_s24, 1 }
  0x21   : > { %p974_p6 = pnand %p638_p10, %p222_p5  ;;  %s175_s30 = sshll.u32 %s165_s29, 4  ;;  %s176_s30 = int_to_ptr.vmem [resolvable:$true] %s175_s30 }
  0x22   : > { %s162_s8 = scalar_lea.sflag [#allocation3], %s948_s24  ;;  %s774_s9 = scalar_lea.vmem %s176_s30, 128 }
  0x23   : > { %p775_p8 = scmp.ne.s32.totalorder %s176_s30, %s774_s9  ;;  %s874_s4 = smov [#allocation2]  }
  0x24   : > { %s779_s6 = sshll.u32 %s874_s4, 4  ;;  %s780_s6 = int_to_ptr.vmem [resolvable:$false] %s779_s6 }
  0x25   : > { %p777_p12 = pnand %p775_p8, %p735_p11  ;;  %s781_s10 = scalar_lea.vmem %s780_s6, 256 }
  0x26   : > { %p782_p10 = scmp.lt.s32.totalorder %s176_s30, %s780_s6  ;;  %p783_p0 = scmp.lt.s32.totalorder %s781_s10, %s774_s9 }
  0x27   : > { %p778_p13 = pneg %p777_p12 }
  0x28   : > { %p784_p1 = por %p783_p0, %p782_p10 }
  0x2a   : > { %p785_p2 = pnand %p784_p1, %p778_p13 }
  0x2c   : > { %788 = shalt.err (!%p785_p2)
}
  0x2d   : > { %661 = dma.hbm_to_vmem [thread:$0]  (!%p952_p9), %s173_s28, 128, %s176_s30, %s162_s8  }
  0x2e   : > { %s651_s24 = sshll.u32 %s867_s16, 5  ;;  %s207_s20 = scalar_lea.vmem [#allocation6], %s635_s5 }
  0x2f   : > { %s215_s11 = scalar_lea.hbm %s1120_s2, %s651_s24  ;;  %s217_s21 = sshll.u32 %s207_s20, 4  ;;  %s218_s21 = int_to_ptr.vmem [resolvable:$true] %s217_s21 }
  0x30   : > { %s802_s29 = scalar_lea.vmem %s218_s21, 32  ;;  %s875_s9 = smov [#allocation6]  }
  0x31   : > { %p803_p3 = scmp.ne.s32.totalorder %s218_s21, %s802_s29  ;;  %s807_s4 = sshll.u32 %s875_s9, 4  ;;  %s808_s4 = int_to_ptr.vmem [resolvable:$false] %s807_s4 }
  0x32   : > { %s809_s6 = scalar_lea.vmem %s808_s4, 64  ;;  %p810_p8 = scmp.lt.s32.totalorder %s218_s21, %s808_s4 }
  0x33   : > { %p805_p4 = pnand %p803_p3, %p735_p11  ;;  %p811_p12 = scmp.lt.s32.totalorder %s809_s6, %s802_s29 }
  0x35   : > { %p806_p5 = pneg %p805_p4  ;;  %p812_p13 = por %p811_p12, %p810_p8 }
  0x37   : > { %p813_p10 = pnand %p812_p13, %p806_p5 }
  0x39   : > { %816 = shalt.err (!%p813_p10)
}
  0x3a   : > { %667 = dma.hbm_to_vmem [thread:$0]  (!%p952_p9), %s215_s11, 32, %s218_s21, %s961_s7  }
  0x3b   : > { %226 = sbr.rel (%p974_p6) target bundleno = 144 (0x90), region = 32  ;;  %s228_s28 = sand.u32 (!%p974_p6), 1, %s855_s13  }
  0x3c   : > { %s639_s30 = sshll.u32 (!%p974_p6), %s228_s28, 3  ;;  %s229_s5 = scalar_lea.sflag (!%p974_p6), [#allocation3], %s228_s28 }
  0x3d   : > { %s232_s8 = scalar_lea.vmem (!%p974_p6), [#allocation2], %s639_s30 }
  0x40   : > { %842 = dma.done.wait (%p939_p7), %s229_s5, 128  }
  0x41   : > { %844 = vsyncadd (%p939_p7), %s229_s5, 4294967168  ;;  %s237_s27 = sand.u32 1, %s625_s18   ;;  %s241_s7 = scalar_lea.vmem [#allocation4], %s639_s30 }
  0x42   : > { %s238_s10 = scalar_lea.sflag [#allocation5], %s237_s27 }
  0x43   : > { %846 = dma.done.wait (%p939_p7), %s238_s10, 160  }
  0x44   : > { %848 = vsyncadd (%p939_p7), %s238_s10, 4294967136  ;;  %v304_v0 = vlaneseq  ;;  %s641_s12 = sshll.u32 %s228_s28, 1  ;;  %p287_p9 = scmp.lt.s32.totalorder %s863_s15, 1  ;;  %vm350_vm0 = vcmask 1043456   ;;  %v1018_v5 = vld [vmem:[%s232_s8] sm:$0xff]  ;;  %v1020_v6 = vld [vmem:[%s241_s7] sm:$0xff] }
  0x45   : > { %s250_s18 = scalar_lea.vmem [#allocation6], %s641_s12  ;;  %v348_v7 = vcombine.high %v1018_v5, %v1018_v5  ;;  %v876_v8 = vmov 0   ;;  %v351_v10 = vsel %vm350_vm0, %v1018_v5, -inf  ;;  %v425_v11 = vcombine.high %v1020_v6, %v1020_v6 }
  0x46   : > { %v1011_v1 = vshrl.u32 %v304_v0, 7  ;;  %v292_v4 = vld [vmem:[%s250_s18] sm:$0x3]  ;;  %v427_v12 = vsel %vm350_vm0, %v1020_v6, -inf  ;;  %s1135_s15 = smov (!%p287_p9, %s863_s15), 1  ;;  %v352_v15 = vrot.slane %v351_v10, 4 }
  0x47   : > { %vm302_vm1 = vcmp.ne.s32.totalorder %v292_v4, 4294967196  ;;  %v358_v16 = vsel %vm350_vm0, %v348_v7, -inf  ;;  %v428_v18 = vrot.slane %v427_v12, 4  ;;  %v434_v19 = vsel %vm350_vm0, %v425_v11, -inf  ;;  %s642_s22 = sshll.u32 %s1135_s15, 2 }
  0x48   : > { %v1015_v2 = vsub.s32 0, %v1011_v1  ;;  %v310_v3 = vsub.s32 1, %v1011_v1  ;;  %v303_v9 = vsel %vm302_vm1, 1, %v876_v8  ;;  %v359_v17 = vrot.slane %v358_v16, 4  ;;  %s1050_s25 = scalar_lea.vmem %s1121_s3, %s642_s22 }
  0x49   : > { %v353_v20 = vmax.f32 %v351_v10, %v352_v15  ;;  %v435_v21 = vrot.slane %v434_v19, 4  ;;  %v429_v23 = vmax.f32 %v427_v12, %v428_v18  ;;  %v877_v29 = vmov 0.0  }
  0x4a   : > { %v307_v13 = vrot.slane %v303_v9, %v1015_v2  ;;  %v1034_v14 = vrot.slane %v303_v9, %v310_v3  ;;  %v360_v22 = vmax.f32 %v358_v16, %v359_v17  ;;  %v323_v41 = vrot.slane %v292_v4, %v1015_v2 }
  0x4b   : > { %v354_v25 = vrot.slane %v353_v20, 2  ;;  %v436_v26 = vmax.f32 %v434_v19, %v435_v21  ;;  %v430_v28 = vrot.slane %v429_v23, 2  ;;  %v327_v42 = vrot.slane %v292_v4, %v310_v3 }
  0x4c   : > { %vm1038_vm2 = vcmp.ne.s32.totalorder %v307_v13, 0  ;;  %vm313_vm3 = vcmp.ne.s32.totalorder %v1034_v14, 0  ;;  %v361_v27 = vrot.slane %v360_v22, 2 }
  0x4d   : > { %v643_v30 = vsel %vm1038_vm2, 1.0, %v877_v29  ;;  %v644_v31 = vsel %vm313_vm3, 1.0, %v877_v29  ;;  %v355_v32 = vmax.f32 %v353_v20, %v354_v25  ;;  %v437_v33 = vrot.slane %v436_v26, 2 }
  0x4e   : > { %v362_v34 = vmax.f32 %v360_v22, %v361_v27  ;;  %v431_v35 = vmax.f32 %v429_v23, %v430_v28  ;;  %v495_v38 = vadd.f32 %v644_v31, %v643_v30  ;;  %v328_v49 = vsel %vm1038_vm2, %v323_v41, 0 }
  0x4f   : > { %v356_v36 = vrot.slane %v355_v32, 1  ;;  %v438_v37 = vmax.f32 %v436_v26, %v437_v33  ;;  %v329_v50 = vsel %vm313_vm3, %v327_v42, 0  ;;  %v335_v54 = vrot.slane %v328_v49, %v1015_v2 }
  0x50   : > { %v363_v39 = vrot.slane %v362_v34, 1  ;;  %v432_v40 = vrot.slane %v431_v35, 1  ;;  %496 = vst [vmem:[%s1050_s25 + $0x2] sm:$0x1] %v495_v38  ;;  %v339_v55 = vrot.slane %v329_v50, %v1015_v2 }
  0x51   : > { %v1053_v43 = vmax.f32 %v355_v32, %v356_v36  ;;  %v439_v44 = vrot.slane %v438_v37, 1  ;;  %vm340_vm4 = vcmp.eq.s32.totalorder %v1011_v1, %v335_v54 }
  0x52   : > { %v1056_v45 = vmax.f32 %v362_v34, %v363_v39  ;;  %v1058_v46 = vmax.f32 %v431_v35, %v432_v40  ;;  %vm341_vm5 = vcmp.eq.s32.totalorder %v1011_v1, %v339_v55  ;;  %v645_v58 = vsel %vm340_vm4, 1.0, %v877_v29 }
  0x53   : > { %v1060_v47 = vmax.f32 %v438_v37, %v439_v44  ;;  %v646_v59 = vsel %vm341_vm5, 1.0, %v877_v29 }
  0x54   : > { %v367_v48 = vcombine.low %v1053_v43, %v1056_v45  ;;  %v397_v60 = vcombine.low %v645_v58, %v646_v59 }
  0x55   : > { %v443_v51 = vcombine.low %v1058_v46, %v1060_v47 }
  0x56   : > { %v369_v52 = vsub.f32 %v1018_v5, %v367_v48  ;;  %v399_v61 = vmul.f32 %v397_v60, %v1018_v5  ;;  %v471_v63 = vmul.f32 %v1020_v6, %v397_v60 }
  0x57   : > { %v445_v53 = vsub.f32 %v1020_v6, %v443_v51 }
  0x58   : > { %v370_v56 = vmul.f32 1.442695, %v369_v52  ;;  %v401_v10 = vcombine.high %v399_v61, %v399_v61  ;;  %v473_v5 = vcombine.high %v471_v63, %v471_v63  ;;  %v403_v15 = vsel %vm350_vm0, %v399_v61, 0.0 }
  0x59   : > { %v446_v57 = vmul.f32 1.442695, %v445_v53  ;;  %v475_v19 = vsel %vm350_vm0, %v471_v63, 0.0  ;;  %v404_v26 = vrot.slane %v403_v15, 4 }
  0x5a   : > { %721 = vpow2.f32 %v370_v56  ;;  %v410_v20 = vsel %vm350_vm0, %v401_v10, 0.0  ;;  %v482_v27 = vsel %vm350_vm0, %v473_v5, 0.0  ;;  %v476_v30 = vrot.slane %v475_v19, 4 }
  0x5b   : > { %723 = vpow2.f32 %v446_v57  ;;  %v411_v33 = vrot.slane %v410_v20, 4  ;;  %v483_v36 = vrot.slane %v482_v27, 4  ;;  %v405_v39 = vadd.f32 %v404_v26, %v403_v15 }
  0x5c   : > { %v477_v42 = vadd.f32 %v476_v30, %v475_v19 }
  0x5d   : > { %v412_v48 = vadd.f32 %v411_v33, %v410_v20  ;;  %v484_v50 = vadd.f32 %v483_v36, %v482_v27  ;;  %v406_v51 = vrot.slane %v405_v39, 2 }
  0x5e   : > { %v478_v52 = vrot.slane %v477_v42, 2 }
  0x5f   : > { %v413_v53 = vrot.slane %v412_v48, 2  ;;  %v485_v54 = vrot.slane %v484_v50, 2  ;;  %v407_v55 = vadd.f32 %v406_v51, %v405_v39 }
  0x60   : > { %v479_v56 = vadd.f32 %v478_v52, %v477_v42 }
  0x61   : > { %v414_v57 = vadd.f32 %v413_v53, %v412_v48  ;;  %v486_v58 = vadd.f32 %v485_v54, %v484_v50  ;;  %v408_v59 = vrot.slane %v407_v55, 1 }
  0x62   : > { %v480_v60 = vrot.slane %v479_v56, 1 }
  0x63   : > { %v415_v61 = vrot.slane %v414_v57, 1  ;;  %v487_v63 = vrot.slane %v486_v58, 1 }
  0x65   : > { %v488_v5 = vadd.f32 %v487_v63, %v486_v58 }
  0x67   : > { %v722_v62 = vpop.eup %721 }
  0x68   : > { %v724_v0 = vpop.eup %723  ;;  %v373_v3 = vcombine.high %v722_v62, %v722_v62  ;;  %v375_v2 = vsel %vm350_vm0, %v722_v62, 0.0 }
  0x69   : > { %v376_v4 = vrot.slane %v375_v2, 4  ;;  %v449_v7 = vcombine.high %v724_v0, %v724_v0  ;;  %v451_v8 = vsel %vm350_vm0, %v724_v0, 0.0 }
  0x6a   : > { %v382_v9 = vsel %vm350_vm0, %v373_v3, 0.0  ;;  %v452_v1 = vrot.slane %v451_v8, 4 }
  0x6b   : > { %v377_v11 = vadd.f32 %v376_v4, %v375_v2  ;;  %v383_v12 = vrot.slane %v382_v9, 4  ;;  %v458_v13 = vsel %vm350_vm0, %v449_v7, 0.0  ;;  %v409_v2 = vadd.f32 %v408_v59, %v407_v55 }
  0x6c   : > { %v453_v6 = vadd.f32 %v452_v1, %v451_v8  ;;  %v459_v16 = vrot.slane %v458_v13, 4  ;;  %v481_v8 = vadd.f32 %v480_v60, %v479_v56 }
  0x6d   : > { %v378_v17 = vrot.slane %v377_v11, 2  ;;  %v384_v18 = vadd.f32 %v383_v12, %v382_v9 }
  0x6e   : > { %v454_v21 = vrot.slane %v453_v6, 2  ;;  %v460_v22 = vadd.f32 %v459_v16, %v458_v13 }
  0x6f   : > { %v379_v23 = vadd.f32 %v378_v17, %v377_v11  ;;  %v385_v25 = vrot.slane %v384_v18, 2  ;;  %v416_v11 = vadd.f32 %v415_v61, %v414_v57 }
  0x70   : > { %v455_v28 = vadd.f32 %v454_v21, %v453_v6  ;;  %v461_v29 = vrot.slane %v460_v22, 2 }
  0x71   : > { %v380_v31 = vrot.slane %v379_v23, 1  ;;  %v386_v32 = vadd.f32 %v385_v25, %v384_v18 }
  0x72   : > { %v456_v34 = vrot.slane %v455_v28, 1  ;;  %v462_v35 = vadd.f32 %v461_v29, %v460_v22 }
  0x73   : > { %v381_v37 = vadd.f32 %v380_v31, %v379_v23  ;;  %v387_v38 = vrot.slane %v386_v32, 1 }
  0x74   : > { %v457_v40 = vadd.f32 %v456_v34, %v455_v28  ;;  %v463_v41 = vrot.slane %v462_v35, 1 }
  0x75   : > { %v388_v44 = vadd.f32 %v387_v38, %v386_v32  ;;  %725 = vlog2.f32 %v381_v37 }
  0x76   : > { %v464_v49 = vadd.f32 %v463_v41, %v462_v35  ;;  %727 = vlog2.f32 %v457_v40 }
  0x77   : > { %729 = vlog2.f32 %v388_v44 }
  0x78   : > { %731 = vlog2.f32 %v464_v49 }
  0x82   : > { %v726_v62 = vpop.eup %725 }
  0x83   : > { %v728_v0 = vpop.eup %727  ;;  %v390_v3 = vmul.f32 0.6931472, %v726_v62 }
  0x84   : > { %v730_v4 = vpop.eup %729  ;;  %v466_v7 = vmul.f32 0.6931472, %v728_v0 }
  0x85   : > { %v732_v9 = vpop.eup %731  ;;  %v392_v10 = vmul.f32 0.6931472, %v730_v4  ;;  %v393_v1 = vadd.f32 %v390_v3, %v1053_v43 }
  0x86   : > { %v468_v12 = vmul.f32 0.6931472, %v732_v9  ;;  %v469_v13 = vadd.f32 %v466_v7, %v1058_v46 }
  0x87   : > { %v394_v15 = vadd.f32 %v392_v10, %v1056_v45  ;;  %v417_v6 = vsub.f32 %v393_v1, %v409_v2 }
  0x88   : > { %v470_v16 = vadd.f32 %v468_v12, %v1060_v47  ;;  %v489_v17 = vsub.f32 %v469_v13, %v481_v8 }
  0x89   : > { %v418_v18 = vsub.f32 %v394_v15, %v416_v11  ;;  %v419_v19 = vsel %vm1038_vm2, %v417_v6, 0.0 }
  0x8a   : > { %v490_v20 = vsub.f32 %v470_v16, %v488_v5  ;;  %v491_v43 = vsel %vm1038_vm2, %v489_v17, 0.0 }
  0x8b   : > { %v420_v21 = vsel %vm313_vm3, %v418_v18, 0.0 }
  0x8c   : > { %v421_v22 = vadd.f32 %v420_v21, %v419_v19  ;;  %v492_v46 = vsel %vm313_vm3, %v490_v20, 0.0 }
  0x8d   : > { %v493_v45 = vadd.f32 %v492_v46, %v491_v43 }
  0x8e   : > { %422 = vst [vmem:[%s1050_s25] sm:$0x1] %v421_v22 }
  0x8f   : > { %494 = vst [vmem:[%s1050_s25 + $0x1] sm:$0x1] %v493_v45 }
  0x90 PF: > { %s19_s17 = sadd.s32 1, %s871_s17   ;;  %s1127_s12 = smov %s855_s13 }
  0x91   : > { %p16_p7 = scmp.ge.s32.totalorder %s19_s17, 4   ;;  %s1128_s13 = smov %s859_s14 }
  0x92   : > { %s1129_s14 = smov %s945_s23  ;;  %s1130_s15 = smov %s867_s16 }
  0x93   : > { %s1131_s16 = smov %s1133_s19  ;;  %18 = sbr.rel (!%p16_p7) target bundleno = 6 (0x6), region = 96 }
  0x98   :  { %519 = vsyncpa [#allocation3], 1 }
  0x99   :  { %521 = vsyncpa [#allocation3 + $0x1], 1 }
  0x9a   :  { %522 = vsyncpa [#allocation5], 1 }
  0x9b   :  { %524 = vsyncpa [#allocation5 + $0x1], 1 }

</bundles_post_ra>
